<compile_context>
chip_gen: v5e
topology: v5e:2x2
jax: 0.10.0
libtpu: 0.0.40
codegen_flags: <defaults>
</compile_context>

<pallas_src>
import jax
import jax.numpy as jnp
from jax.experimental import pallas as pl
from jax.experimental.pallas import tpu as pltpu


# ----------------------------------------------------------------------------- helpers
def _round_up(x, m):
    return ((x + m - 1) // m) * m


def _pad_dim(d):
    """Lane-dense padding: 128 minimum, 256-aligned once beyond 128 (v6e/v7x MXU)."""
    p = _round_up(d, 128)
    if p > 128:
        p = _round_up(d, 256)
    return p


def _pad_to(a, shape):
    """Zero-pad `a` up to `shape`; no-op (no copy) when already that shape."""
    if tuple(a.shape) == tuple(shape):
        return a
    return jnp.pad(a, [(0, t - s) for s, t in zip(a.shape, shape)])


_VMEM_BUDGET = 48 * 1024 * 1024          # working-set budget (v7x has 64 MiB physical)
_VMEM_LIMIT_CAP = 56 * 1024 * 1024       # never request a scoped limit above this


def _tile_vmem_bytes(row_t, hid_t, d_p, in_bytes, out_bytes, use_scratch):
    """Approximate double-buffered VMEM working set of one grid step."""
    b = 2 * row_t * d_p * in_bytes           # x tile
    b += 2 * d_p * hid_t * in_bytes          # W1 slice
    b += 2 * hid_t * d_p * in_bytes          # W2 slice
    b += 2 * (hid_t + d_p) * in_bytes        # b1 / b2 slices
    b += 2 * row_t * d_p * out_bytes         # output tile
    if use_scratch:
        b += row_t * d_p * 4                 # f32 accumulator
    return b


# ----------------------------------------------------------------------------- kernels
def _ffn_kernel_inplace(x_ref, w1_ref, b1_ref, w2_ref, b2_ref, o_ref):
    """f32 output: accumulate the hidden reduction directly into the resident o_ref tile."""
    k = pl.program_id(1)

    # linear1 partial: (TM, d_model) @ (d_model, th), f32 accumulation on the MXU
    h = jnp.dot(x_ref[...], w1_ref[...], preferred_element_type=jnp.float32)
    h = h + b1_ref[...].astype(jnp.float32)

    # swiglu(h) = silu(h) * h  (f32 on VPU/EUP)
    g = (h * jax.nn.sigmoid(h)) * h

    # dropout (eval mode) == identity

    # linear2 partial: (TM, th) @ (th, d_model)
    g = g.astype(x_ref.dtype)
    part = jnp.dot(g, w2_ref[...], preferred_element_type=jnp.float32)

    @pl.when(k == 0)
    def _():
        o_ref[...] = part + b2_ref[...].astype(jnp.float32)

    @pl.when(k > 0)
    def _():
        o_ref[...] += part


def _ffn_kernel_scratch(x_ref, w1_ref, b1_ref, w2_ref, b2_ref, o_ref, acc_ref):
    """Sub-f32 output: accumulate in an f32 VMEM scratch, cast once at the end."""
    k = pl.program_id(1)

    h = jnp.dot(x_ref[...], w1_ref[...], preferred_element_type=jnp.float32)
    h = h + b1_ref[...].astype(jnp.float32)
    g = (h * jax.nn.sigmoid(h)) * h
    g = g.astype(x_ref.dtype)
    part = jnp.dot(g, w2_ref[...], preferred_element_type=jnp.float32)

    @pl.when(k == 0)
    def _():
        acc_ref[...] = part

    @pl.when(k > 0)
    def _():
        acc_ref[...] += part

    @pl.when(k == pl.num_programs(1) - 1)
    def _():
        o_ref[...] = (acc_ref[...] + b2_ref[...].astype(jnp.float32)).astype(o_ref.dtype)


# ----------------------------------------------------------------------------- wrapper
def positionwise_feed_forward(x, w1, b1, w2, b2, *, row_tile=1024, hidden_tile=512):
    """x: (B, S, d_model). w1: (d_model, hidden), b1: (hidden,),
    w2: (hidden, d_model), b2: (d_model,). Returns (B, S, d_model).

    Weights may be passed pre-padded to (d_model_p, hidden_p)/(hidden_p, d_model_p);
    padding is then skipped (zero per-call copies)."""
    B, S, d_model = x.shape
    hidden = b1.shape[0] if b1.shape[0] >= w1.shape[1] else w1.shape[1]
    hidden = min(b1.shape[0], w1.shape[1])     # logical (unpadded) hidden size
    N = B * S
    dtype = x.dtype
    in_bytes = jnp.dtype(dtype).itemsize
    out_bytes = in_bytes
    use_scratch = dtype != jnp.float32

    # ---- padded sizes & tile selection -------------------------------------------
    d_model_p = _pad_dim(d_model)
    hidden_p_min = _pad_dim(hidden)

    # row tile: multiple of 8, capped at padded row count; force >=2 row tiles when
    # possible so the "parallel" axis feeds both v7x TensorCores.
    row_tile_eff = min(row_tile, _round_up(N, 8))
    if N > 8 and _round_up(N, 8) <= row_tile_eff:
        row_tile_eff = max(8, _round_up((N + 1) // 2, 8))

    hidden_tile_eff = min(_round_up(hidden_tile, 128), hidden_p_min)

    # Shrink until the double-buffered working set fits the VMEM budget; shrink the
    # hidden tile first (does not change weight HBM traffic), the row tile last.
    while _tile_vmem_bytes(row_tile_eff, hidden_tile_eff, d_model_p,
                           in_bytes, out_bytes, use_scratch) > _VMEM_BUDGET:
        if hidden_tile_eff > 256:
            hidden_tile_eff = _round_up(hidden_tile_eff // 2, 128)
        elif row_tile_eff > 64:
            row_tile_eff = _round_up(row_tile_eff // 2, 8)
        else:
            break

    hidden_p = _round_up(hidden_p_min, hidden_tile_eff)
    N_p = _round_up(N, row_tile_eff)
    grid = (N_p // row_tile_eff, hidden_p // hidden_tile_eff)

    # ---- operand padding (skipped when already aligned) ---------------------------
    # Zero padding preserves the math: padded d_model rows of W1 / hidden rows of W2
    # contribute zero; padded output rows/cols are sliced off.
    x2 = _pad_to(x.reshape(N, d_model), (N_p, d_model_p))
    w1p = _pad_to(w1, (d_model_p, hidden_p))
    b1p = _pad_to(b1.reshape(1, -1), (1, hidden_p))
    w2p = _pad_to(w2, (hidden_p, d_model_p))
    b2p = _pad_to(b2.reshape(1, -1), (1, d_model_p))

    # ---- cost estimate (weights are fetched once per row tile) --------------------
    cost = pl.CostEstimate(
        flops=4 * N * d_model * hidden,
        transcendentals=N * hidden,
        bytes_accessed=((x2.size + b1p.size + b2p.size + N_p * d_model_p) * in_bytes
                        + grid[0] * (w1p.size + w2p.size) * in_bytes),
    )

    vmem_needed = _tile_vmem_bytes(row_tile_eff, hidden_tile_eff, d_model_p,
                                   in_bytes, out_bytes, use_scratch)
    vmem_limit = int(min(max(vmem_needed * 5 // 4, 32 << 20), _VMEM_LIMIT_CAP))

    kernel = _ffn_kernel_scratch if use_scratch else _ffn_kernel_inplace
    scratch_shapes = ([pltpu.VMEM((row_tile_eff, d_model_p), jnp.float32)]
                      if use_scratch else [])

    out = pl.pallas_call(
        kernel,
        out_shape=jax.ShapeDtypeStruct((N_p, d_model_p), dtype),
        grid_spec=pltpu.PrefetchScalarGridSpec(
            num_scalar_prefetch=0,
            grid=grid,
            in_specs=[
                pl.BlockSpec((row_tile_eff, d_model_p), lambda i, k: (i, 0)),     # x tile
                pl.BlockSpec((d_model_p, hidden_tile_eff), lambda i, k: (0, k)),  # W1 slice
                pl.BlockSpec((1, hidden_tile_eff), lambda i, k: (0, k)),          # b1 slice
                pl.BlockSpec((hidden_tile_eff, d_model_p), lambda i, k: (k, 0)),  # W2 slice
                pl.BlockSpec((1, d_model_p), lambda i, k: (0, 0)),                # b2
            ],
            out_specs=pl.BlockSpec((row_tile_eff, d_model_p), lambda i, k: (i, 0)),
            scratch_shapes=scratch_shapes,
        ),
        compiler_params=pltpu.CompilerParams(
            dimension_semantics=("parallel", "arbitrary"),
            vmem_limit_bytes=vmem_limit,
        ),
        cost_estimate=cost,
    )(x2, w1p, b1p, w2p, b2p)

    return out[:N, :d_model].reshape(B, S, d_model)


ffn_jit = jax.jit(positionwise_feed_forward, static_argnames=("row_tile", "hidden_tile"))


def reference_ffn(x, w1, b1, w2, b2):
    h = jnp.einsum("bsd,dh->bsh", x.astype(jnp.float32), w1.astype(jnp.float32))
    h = h + b1.astype(jnp.float32)
    g = (h * jax.nn.sigmoid(h)) * h
    return jnp.einsum("bsh,hd->bsd", g, w2.astype(jnp.float32)) + b2.astype(jnp.float32)


# ----------------------------------------------------------------------------- test
if __name__ == "__main__":
    def make_params(key, d_model, hidden, dtype):
        kw1, kb1, kw2, kb2 = jax.random.split(key, 4)
        lim1 = 1.0 / (d_model ** 0.5)
        lim2 = 1.0 / (hidden ** 0.5)
        w1 = jax.random.uniform(kw1, (d_model, hidden), minval=-lim1, maxval=lim1).astype(dtype)
        b1 = jax.random.uniform(kb1, (hidden,), minval=-lim1, maxval=lim1).astype(dtype)
        w2 = jax.random.uniform(kw2, (hidden, d_model), minval=-lim2, maxval=lim2).astype(dtype)
        b2 = jax.random.uniform(kb2, (d_model,), minval=-lim2, maxval=lim2).astype(dtype)
        return w1, b1, w2, b2

    key = jax.random.PRNGKey(0)
    k1, k2, k3 = jax.random.split(key, 3)

    # Test 1: small f32 case (in-place accumulation path), batch=2, seq=8, d_model=32, hidden=64
    B, S, d_model, hidden = 2, 8, 32, 64
    kx, kp = jax.random.split(k1)
    x = jax.random.normal(kx, (B, S, d_model), dtype=jnp.float32)
    w1, b1, w2, b2 = make_params(kp, d_model, hidden, jnp.float32)
    out = jax.block_until_ready(ffn_jit(x, w1, b1, w2, b2))
    ref = reference_ffn(x, w1, b1, w2, b2)
    assert out.shape == (B, S, d_model)
    assert jnp.allclose(out, ref, atol=1e-4, rtol=1e-4), "f32 single-hidden-tile mismatch"

    # Test 2: f32 with a tiled hidden reduction (grid[1] > 1)
    d_model2, hidden2 = 32, 256
    kx, kp = jax.random.split(k2)
    x2 = jax.random.normal(kx, (B, S, d_model2), dtype=jnp.float32)
    p2 = make_params(kp, d_model2, hidden2, jnp.float32)
    out2 = jax.block_until_ready(ffn_jit(x2, *p2, hidden_tile=128))
    ref2 = reference_ffn(x2, *p2)
    assert jnp.allclose(out2, ref2, atol=1e-4, rtol=1e-4), "f32 tiled-hidden mismatch"

    # Test 3: bf16 (f32-scratch accumulation path)
    kx, kp = jax.random.split(k3)
    xb = jax.random.normal(kx, (B, S, d_model), dtype=jnp.float32).astype(jnp.bfloat16)
    pb = make_params(kp, d_model, hidden, jnp.bfloat16)
    outb = jax.block_until_ready(ffn_jit(xb, *pb))
    refb = reference_ffn(xb, *pb)
    assert outb.shape == (B, S, d_model)
    assert jnp.allclose(outb.astype(jnp.float32), refb, atol=2e-1, rtol=2e-1), "bf16 mismatch"

    print("KERNEL_OK")
</pallas_src>

<mosaic_0001>
module attributes {stable_mosaic.version = 11 : i64} {
  func.func @_ffn_kernel_inplace(%arg0: i32, %arg1: i32, %arg2: memref<8x128xf32, #tpu.memory_space<vmem>>, %arg3: memref<128x128xf32, #tpu.memory_space<vmem>>, %arg4: memref<1x128xf32, #tpu.memory_space<vmem>>, %arg5: memref<128x128xf32, #tpu.memory_space<vmem>>, %arg6: memref<1x128xf32, #tpu.memory_space<vmem>>, %arg7: memref<8x128xf32, #tpu.memory_space<vmem>>) attributes {dimension_semantics = [#tpu.dimension_semantics<parallel>, #tpu.dimension_semantics<arbitrary>], iteration_bounds = array<i64: 2, 1>, scalar_prefetch = 0 : i64, scratch_operands = 0 : i64, tpu.core_type = #tpu.core_type<tc>, window_params = [{transform_indices = @transform_0, window_bounds = array<i64: 8, 128>}, {transform_indices = @transform_1, window_bounds = array<i64: 128, 128>}, {transform_indices = @transform_2, window_bounds = array<i64: 1, 128>}, {transform_indices = @transform_3, window_bounds = array<i64: 128, 128>}, {pipeline_mode = #tpu.pipeline_mode<synchronous>, transform_indices = @transform_4, window_bounds = array<i64: 1, 128>}, {transform_indices = @transform_5, window_bounds = array<i64: 8, 128>}]} {
    %c0 = arith.constant 0 : index
    %c0_0 = arith.constant 0 : index
    %0 = vector.load %arg2[%c0, %c0_0] : memref<8x128xf32, #tpu.memory_space<vmem>>, vector<8x128xf32>
    %c0_1 = arith.constant 0 : index
    %c0_2 = arith.constant 0 : index
    %1 = vector.load %arg3[%c0_1, %c0_2] : memref<128x128xf32, #tpu.memory_space<vmem>>, vector<128x128xf32>
    %cst = arith.constant dense<0.000000e+00> : vector<8x128xf32>
    %2 = tpu.matmul %0, %1, %cst {dimension_numbers = #tpu.dot_dimension_numbers<[1], [0], [0], [1], [0, 0, 1, 1], [], []>} : vector<8x128xf32>, vector<128x128xf32>, vector<8x128xf32> -> vector<8x128xf32>
    %c0_3 = arith.constant 0 : index
    %c0_4 = arith.constant 0 : index
    %3 = vector.load %arg4[%c0_3, %c0_4] : memref<1x128xf32, #tpu.memory_space<vmem>>, vector<1x128xf32>
    %4 = vector.broadcast %3 : vector<1x128xf32> to vector<8x128xf32>
    %5 = arith.addf %2, %4 : vector<8x128xf32>
    %6 = arith.negf %5 : vector<8x128xf32>
    %7 = math.exp %6 : vector<8x128xf32>
    %cst_5 = arith.constant 1.000000e+00 : f32
    %8 = vector.broadcast %cst_5 : f32 to vector<8x128xf32>
    %9 = arith.addf %8, %7 : vector<8x128xf32>
    %10 = arith.divf %8, %9 : vector<8x128xf32>
    %11 = arith.mulf %5, %10 : vector<8x128xf32>
    %12 = arith.mulf %11, %5 : vector<8x128xf32>
    %c0_6 = arith.constant 0 : index
    %c0_7 = arith.constant 0 : index
    %13 = vector.load %arg5[%c0_6, %c0_7] : memref<128x128xf32, #tpu.memory_space<vmem>>, vector<128x128xf32>
    %cst_8 = arith.constant dense<0.000000e+00> : vector<8x128xf32>
    %14 = tpu.matmul %12, %13, %cst_8 {dimension_numbers = #tpu.dot_dimension_numbers<[1], [0], [0], [1], [0, 0, 1, 1], [], []>} : vector<8x128xf32>, vector<128x128xf32>, vector<8x128xf32> -> vector<8x128xf32>
    %c0_i32 = arith.constant 0 : i32
    %15 = arith.cmpi eq, %arg1, %c0_i32 : i32
    %16 = arith.extui %15 : i1 to i32
    %c0_i32_9 = arith.constant 0 : i32
    %17 = arith.cmpi ne, %16, %c0_i32_9 : i32
    scf.if %17 {
      %c0_12 = arith.constant 0 : index
      %c0_13 = arith.constant 0 : index
      %21 = vector.load %arg6[%c0_12, %c0_13] : memref<1x128xf32, #tpu.memory_space<vmem>>, vector<1x128xf32>
      %22 = vector.broadcast %21 : vector<1x128xf32> to vector<8x128xf32>
      %23 = arith.addf %14, %22 : vector<8x128xf32>
      %c0_14 = arith.constant 0 : index
      %c0_15 = arith.constant 0 : index
      %24 = vector.load %arg7[%c0_14, %c0_15] : memref<8x128xf32, #tpu.memory_space<vmem>>, vector<8x128xf32>
      tpu.vector_store %arg7[%c0_14, %c0_15], %23 {strides = array<i32>} : memref<8x128xf32, #tpu.memory_space<vmem>>, vector<8x128xf32>,
    } else {
    }
    %c0_i32_10 = arith.constant 0 : i32
    %18 = arith.cmpi sgt, %arg1, %c0_i32_10 : i32
    %19 = arith.extui %18 : i1 to i32
    %c0_i32_11 = arith.constant 0 : i32
    %20 = arith.cmpi ne, %19, %c0_i32_11 : i32
    scf.if %20 {
      %c0_12 = arith.constant 0 : index
      %c0_13 = arith.constant 0 : index
      %21 = vector.load %arg7[%c0_12, %c0_13] : memref<8x128xf32, #tpu.memory_space<vmem>>, vector<8x128xf32>
      %22 = arith.addf %21, %14 : vector<8x128xf32>
      %c0_14 = arith.constant 0 : index
      %c0_15 = arith.constant 0 : index
      %23 = vector.load %arg7[%c0_14, %c0_15] : memref<8x128xf32, #tpu.memory_space<vmem>>, vector<8x128xf32>
      tpu.vector_store %arg7[%c0_14, %c0_15], %22 {strides = array<i32>} : memref<8x128xf32, #tpu.memory_space<vmem>>, vector<8x128xf32>,
    } else {
    }
    return
  }
  func.func @transform_0(%arg0: i32, %arg1: i32) -> (i32, i32) {
    %c0_i32 = arith.constant 0 : i32
    %c0_i32_0 = arith.constant 0 : i32
    return %arg0, %c0_i32 : i32, i32
  }
  func.func @transform_1(%arg0: i32, %arg1: i32) -> (i32, i32) {
    %c0_i32 = arith.constant 0 : i32
    %c0_i32_0 = arith.constant 0 : i32
    return %c0_i32, %arg1 : i32, i32
  }
  func.func @transform_2(%arg0: i32, %arg1: i32) -> (i32, i32) {
    %c0_i32 = arith.constant 0 : i32
    %c0_i32_0 = arith.constant 0 : i32
    return %c0_i32, %arg1 : i32, i32
  }
  func.func @transform_3(%arg0: i32, %arg1: i32) -> (i32, i32) {
    %c0_i32 = arith.constant 0 : i32
    %c0_i32_0 = arith.constant 0 : i32
    return %arg1, %c0_i32 : i32, i32
  }
  func.func @transform_4(%arg0: i32, %arg1: i32) -> (i32, i32) {
    %c0_i32 = arith.constant 0 : i32
    %c0_i32_0 = arith.constant 0 : i32
    %c0_i32_1 = arith.constant 0 : i32
    return %c0_i32, %c0_i32_0 : i32, i32
  }
  func.func @transform_5(%arg0: i32, %arg1: i32) -> (i32, i32) {
    %c0_i32 = arith.constant 0 : i32
    %c0_i32_0 = arith.constant 0 : i32
    return %arg0, %c0_i32 : i32, i32
  }
}

</mosaic_0001>

<bundles_post_ra>
// kernel: positionwise_feed_forward.1
= control target key start
LH: loop header
LB: loop body
LE: loop exit
PB: predicated region body
PF: predicated region fallthrough
CT: control target
= control target key end

     0   :  { %s601_s18 = smov 0   ;;  %s603_s19 = smov 0   ;;  %s747_s0 = inlined_call_operand.vmem [shape: f32[16,128], index: 0, kind: input, shape index: {}]   ;;  %s748_s1 = inlined_call_operand.vmem [shape: f32[128,128], index: 1, kind: input, shape index: {}]   ;;  %s749_s2 = inlined_call_operand.vmem [shape: f32[1,128], index: 2, kind: input, shape index: {}]   ;;  %s750_s3 = inlined_call_operand.vmem [shape: f32[128,128], index: 3, kind: input, shape index: {}]   ;;  %s751_s4 = inlined_call_operand.vmem [shape: f32[1,128], index: 4, kind: input, shape index: {}]   ;;  %s752_s5 = inlined_call_operand.vmem [shape: f32[16,128], index: 5, kind: output, shape index: {}]  }
   0x1   :  { %s605_s20 = smov 0  }
   0x2 LB: > { %s27_s21 = sadd.s32 1, %s565_s19  ;;  %p511_p0 = scmp.ge.s32.totalorder %s569_s20, 1  ;;  %s569_s20 = sphi %s605_s20, %s15_s20   ;;  %s565_s19 = sphi %s603_s19, %s754_s19   ;;  %s561_s18 = sphi %s601_s18, %s753_s18  }
   0x3   : > { %p29_p1 = scmp.ge.s32.totalorder %s27_s21, 2  ;;  %p226_p2 = scmp.lt.s32.totalorder %s569_s20, 3 }
   0x5   : > { %s756_s21 = smov (%p29_p1, %s27_s21), 0  ;;  %p227_p3 = pnand %p511_p0, %p226_p2 }
   0x6   : > { %p264_p4 = scmp.lt.s32.totalorder (!%p227_p3), %s561_s18, 1 }
   0x7   : > { %230 = sbr.rel (%p227_p3) target bundleno = 333 (0x14d), region = 40 }
   0xc   : > { %v301_v0 = vld [vmem:[%s748_s1 + $0x78] sm:$0xff]  ;;  %v300_v1 = vld [vmem:[%s748_s1 + $0x70] sm:$0xff]  ;;  %v299_v2 = vld [vmem:[%s748_s1 + $0x68] sm:$0xff]  ;;  %s758_s18 = smov (!%p264_p4, %s561_s18), 1 }
   0xd   : > { %306 = vmatpush.msra.mxu0 %v301_v0  ;;  %v298_v3 = vld [vmem:[%s748_s1 + $0x60] sm:$0xff]  ;;  %v297_v4 = vld [vmem:[%s748_s1 + $0x58] sm:$0xff]  ;;  %v296_v5 = vld [vmem:[%s748_s1 + $0x50] sm:$0xff]  ;;  %s512_s27 = sshll.u32 %s758_s18, 3 }
   0xe   : > { %v295_v6 = vld [vmem:[%s748_s1 + $0x48] sm:$0xff]  ;;  %v294_v7 = vld [vmem:[%s748_s1 + $0x40] sm:$0xff]  ;;  %v293_v8 = vld [vmem:[%s748_s1 + $0x38] sm:$0xff]  ;;  %s267_s9 = scalar_lea.vmem %s747_s0, %s512_s27  ;;  %s284_s10 = scalar_lea.vmem %s752_s5, %s512_s27 }
   0xf   : > { %307 = vmatpush.msra.mxu0 %v300_v1  ;;  %v292_v9 = vld [vmem:[%s748_s1 + $0x30] sm:$0xff]  ;;  %v291_v10 = vld [vmem:[%s748_s1 + $0x28] sm:$0xff]  ;;  %v290_v11 = vld [vmem:[%s748_s1 + $0x20] sm:$0xff] }
  0x10   : > { %v289_v12 = vld [vmem:[%s748_s1 + $0x18] sm:$0xff]  ;;  %v288_v13 = vld [vmem:[%s748_s1 + $0x10] sm:$0xff]  ;;  %v287_v14 = vld [vmem:[%s748_s1 + $0x8] sm:$0xff] }
  0x11   : > { %308 = vmatpush.msra.mxu0 %v299_v2  ;;  %v286_v15 = vld [vmem:[%s748_s1] sm:$0xff]  ;;  %v362_v17 = vld [vmem:[%s750_s3 + $0x78] sm:$0xff]  ;;  %v361_v18 = vld [vmem:[%s750_s3 + $0x70] sm:$0xff] }
  0x12   : > { %v285_v16 = vld [vmem:[%s267_s9] sm:$0xff]  ;;  %363 = vmatpush.msra.mxu1 %v362_v17  ;;  %v360_v19 = vld [vmem:[%s750_s3 + $0x68] sm:$0xff]  ;;  %v358_v21 = vld [vmem:[%s750_s3 + $0x58] sm:$0xff] }
  0x13   : > { %309 = vmatpush.msra.mxu0 %v298_v3  ;;  %v359_v20 = vld [vmem:[%s750_s3 + $0x60] sm:$0xff]  ;;  %v357_v22 = vld [vmem:[%s750_s3 + $0x50] sm:$0xff]  ;;  %v356_v23 = vld [vmem:[%s750_s3 + $0x48] sm:$0xff] }
  0x14   : > { %364 = vmatpush.msra.mxu1 %v361_v18  ;;  %v355_v24 = vld [vmem:[%s750_s3 + $0x40] sm:$0xff]  ;;  %v354_v25 = vld [vmem:[%s750_s3 + $0x38] sm:$0xff]  ;;  %v353_v26 = vld [vmem:[%s750_s3 + $0x30] sm:$0xff] }
  0x15   : > { %310 = vmatpush.msra.mxu0 %v297_v4  ;;  %v352_v27 = vld [vmem:[%s750_s3 + $0x28] sm:$0xff]  ;;  %v351_v28 = vld [vmem:[%s750_s3 + $0x20] sm:$0xff]  ;;  %v350_v29 = vld [vmem:[%s750_s3 + $0x18] sm:$0xff] }
  0x16   : > { %365 = vmatpush.msra.mxu1 %v360_v19  ;;  %v349_v30 = vld [vmem:[%s750_s3 + $0x10] sm:$0xff]  ;;  %v541_v31 = vld [vmem:[%s749_s2] ss:$0 sm:$0xff]  ;;  %v348_v32 = vld [vmem:[%s750_s3 + $0x8] sm:$0xff] }
  0x17   : > { %311 = vmatpush.msra.mxu0 %v296_v5  ;;  %v347_v33 = vld [vmem:[%s750_s3] sm:$0xff] }
  0x18   : > { %366 = vmatpush.msra.mxu1 %v359_v20  ;;  %v542_v51 = vld [vmem:[%s751_s4] ss:$0 sm:$0xff] }
  0x19   : > { %312 = vmatpush.msra.mxu0 %v295_v6 }
  0x1a   : > { %367 = vmatpush.msra.mxu1 %v358_v21 }
  0x1b   : > { %313 = vmatpush.msra.mxu0 %v294_v7 }
  0x1c   : > { %368 = vmatpush.msra.mxu1 %v357_v22 }
  0x1d   : > { %314 = vmatpush.msra.mxu0 %v293_v8 }
  0x1e   : > { %369 = vmatpush.msra.mxu1 %v356_v23 }
  0x1f   : > { %315 = vmatpush.msra.mxu0 %v292_v9 }
  0x20   : > { %370 = vmatpush.msra.mxu1 %v355_v24 }
  0x21   : > { %316 = vmatpush.msra.mxu0 %v291_v10 }
  0x22   : > { %371 = vmatpush.msra.mxu1 %v354_v25 }
  0x23   : > { %317 = vmatpush.msra.mxu0 %v290_v11 }
  0x24   : > { %372 = vmatpush.msra.mxu1 %v353_v26 }
  0x25   : > { %318 = vmatpush.msra.mxu0 %v289_v12 }
  0x26   : > { %373 = vmatpush.msra.mxu1 %v352_v27 }
  0x27   : > { %319 = vmatpush.msra.mxu0 %v288_v13 }
  0x28   : > { %374 = vmatpush.msra.mxu1 %v351_v28 }
  0x29   : > { %320 = vmatpush.msra.mxu0 %v287_v14 }
  0x2a   : > { %375 = vmatpush.msra.mxu1 %v350_v29 }
  0x2b   : > { %321 = vmatpush.msra.mxu0 %v286_v15 }
  0x2c   : > { %322 = vmatmul.f32.vlgmr.msra.gmra.mxu0 %v285_v16  ;;  %376 = vmatpush.msra.mxu1 %v349_v30 }
  0x2e   : > { %377 = vmatpush.msra.mxu1 %v348_v32 }
  0x30   : > { %378 = vmatpush.msra.mxu1 %v347_v33 }
  0xa9   : > { %v323_v34 = vpop.f32.mrf.mxu0 }
  0xaa   : > { %v324_v35 = vadd.f32 %v541_v31, %v323_v34 }
  0xac   : > { %v514_v36 = vmul.f32 -1.442695, %v324_v35 }
  0xae   : > { %543 = vpow2.f32 %v514_v36 }
  0xb4   : > { %v544_v37 = vpop.eup %543 }
  0xb5   : > { %v329_v38 = vadd.f32 1.0, %v544_v37 }
  0xb7   : > { %545 = vrcp.f32 %v329_v38  ;;  %v341_v42 = vand.u32 2147483648, %v329_v38  ;;  %v339_v44 = vand.u32 2147483647, %v329_v38  ;;  %vm335_vm1 = vweird.f32 %v329_v38 }
  0xb9   : > { %v342_v46 = vor.u32 1.1754944e-38, %v341_v42  ;;  %vm340_vm3 = vcmp.eq.f32.partialorder %v339_v44, 8.507059e+37 }
  0xbd   : > { %v546_v39 = vpop.eup %545 }
  0xbe   : > { %v331_v40 = vmul.f32 %v546_v39, %v329_v38  ;;  %vm336_vm0 = vweird.f32 %v546_v39 }
  0xbf   : > { %vm337_vm2 = vmor %vm335_vm1, %vm336_vm0 }
  0xc0   : > { %v332_v41 = vsub.f32 1.0, %v331_v40 }
  0xc2   : > { %v333_v43 = vmul.f32 %v546_v39, %v332_v41 }
  0xc4   : > { %v334_v45 = vadd.f32 %v546_v39, %v333_v43 }
  0xc6   : > { %v338_v47 = vsel %vm337_vm2, %v546_v39, %v334_v45 }
  0xc7   : > { %v343_v48 = vsel %vm340_vm3, %v342_v46, %v338_v47 }
  0xc8   : > { %v345_v49 = vmul.f32 %v343_v48, %v324_v35 }
  0xca   : > { %v346_v50 = vmul.f32 %v345_v49, %v324_v35 }
  0xcc   : > { %379 = vmatmul.f32.vlgmr.msra.gmra.mxu1 %v346_v50 }
 0x149   : > { %v380_v52 = vpop.f32.mrf.mxu1 }
 0x14a   : > { %v391_v53 = vadd.f32 %v542_v51, %v380_v52 }
 0x14c   : > { %392 = vst [vmem:[%s284_s10] sm:$0xff] %v391_v53 }
 0x14d PF: > { %s15_s20 = sadd.s32 1, %s569_s20   ;;  %s753_s18 = smov %s565_s19 }
 0x14e   : > { %p12_p5 = scmp.ge.s32.totalorder %s15_s20, 4   ;;  %s754_s19 = smov %s756_s21 }
 0x150   :  { %14 = sbr.rel (!%p12_p5) target bundleno = 2 (0x2), region = 87 }

</bundles_post_ra>
